<compile_context>
chip_gen: v6e
topology: v6e:2x2x1
jax: 0.10.0
libtpu: 0.0.40
codegen_flags: <defaults>
</compile_context>

<pallas_src>
import functools
import math

import jax
import jax.numpy as jnp
from jax.experimental import pallas as pl
from jax.experimental.pallas import tpu as pltpu


def _mlp_epilogue(out_f32, w1_ref, b1_ref, w2_ref, b2_ref, o_ref):
    """(1+eps)x + agg  ->  Linear -> ReLU -> Linear, written to o_ref."""
    w1 = w1_ref[...]
    h = jnp.dot(out_f32.astype(w1.dtype), w1,
                preferred_element_type=jnp.float32) + b1_ref[...]
    h = jnp.maximum(h, 0.0)
    w2 = w2_ref[...]
    y = jnp.dot(h.astype(w2.dtype), w2,
                preferred_element_type=jnp.float32) + b2_ref[...]
    o_ref[...] = y.astype(o_ref.dtype)


def gin_kernel_resident(eps_ref, a_ref, x_ref, w1_ref, b1_ref, w2_ref, b2_ref,
                        o_ref, acc_ref, *, tm, tk):
    """x fully VMEM-resident; kernel slices both the K slab and the row tile."""
    i = pl.program_id(0)
    k = pl.program_id(1)

    @pl.when(k == 0)
    def _init():
        acc_ref[...] = jnp.zeros_like(acc_ref)

    # int8 adjacency tile -> compute dtype (VPU cast is free under the mem-bound roofline)
    a = a_ref[...].astype(jnp.float32).astype(x_ref.dtype)
    xk = x_ref[pl.ds(pl.multiple_of(k * tk, tk), tk), :]
    acc_ref[...] += jnp.dot(a, xk, preferred_element_type=jnp.float32)

    @pl.when(k == pl.num_programs(1) - 1)
    def _epilogue():
        eps = eps_ref[0, 0]
        x_row = x_ref[pl.ds(pl.multiple_of(i * tm, tm), tm), :]
        out = (1.0 + eps) * x_row.astype(jnp.float32) + acc_ref[...]
        _mlp_epilogue(out, w1_ref, b1_ref, w2_ref, b2_ref, o_ref)


def gin_kernel_stream(eps_ref, a_ref, xk_ref, xq_ref, w1_ref, b1_ref, w2_ref,
                      b2_ref, o_ref, acc_ref):
    """Fallback: x streamed as a K slab + row tile (used when x can't be resident)."""
    k = pl.program_id(1)

    @pl.when(k == 0)
    def _init():
        acc_ref[...] = jnp.zeros_like(acc_ref)

    a = a_ref[...].astype(jnp.float32).astype(xk_ref.dtype)
    acc_ref[...] += jnp.dot(a, xk_ref[...], preferred_element_type=jnp.float32)

    @pl.when(k == pl.num_programs(1) - 1)
    def _epilogue():
        eps = eps_ref[0, 0]
        out = (1.0 + eps) * xq_ref[...].astype(jnp.float32) + acc_ref[...]
        _mlp_epilogue(out, w1_ref, b1_ref, w2_ref, b2_ref, o_ref)


def _round_up(v, m):
    return ((v + m - 1) // m) * m


def gin_conv(x, edge_index, params, eps=0.0, *,
             compute_dtype=jnp.bfloat16, a_dtype=jnp.int8,
             tile_m=256, tile_k=2048, resident_x=None):
    """GINConv forward.

    x: [N, F] float32, edge_index: [2, E] int32, params: (w1, b1, w2, b2).
    compute_dtype: dtype fed to the MXU (bf16 fast path; f32 for exact checking).
    a_dtype: HBM storage dtype of the adjacency (int8 assumes edge multiplicities
             <= 127; pass bf16/f32 for heavy multigraphs).
    resident_x: force (True/False) the x-resident path; None = auto by VMEM budget.
    """
    N, F = x.shape
    w1, b1, w2, b2 = params
    H = w1.shape[1]
    Fo = w2.shape[1]

    LANE = 128
    SUB = 32                       # sublane alignment that also covers int8 packing
    Fp, Hp, Fop = _round_up(F, LANE), _round_up(H, LANE), _round_up(Fo, LANE)

    itm = jnp.dtype(compute_dtype).itemsize
    a_itm = jnp.dtype(a_dtype).itemsize
    out_itm = x.dtype.itemsize

    # ---- per-generation VMEM budget: ~75% of physical VMEM per TensorCore ----
    try:
        cap = int(pltpu.get_tpu_info().vmem_capacity_bytes) * 3 // 4
    except Exception:
        cap = 48 << 20             # conservative (v7x-sized) fallback
    cap = max(cap, 32 << 20)

    # ---- row tile (multiple of 32 so int8/bf16/f32 tiles all stay aligned) ----
    Nal = _round_up(N, SUB)
    tm = max(SUB, min(_round_up(tile_m, SUB), Nal))

    # resident weights + scratch / epilogue intermediates (double-buffer accounting)
    wgt_bytes = 2 * ((Fp * Hp + Hp * Fop) * itm + (Hp + Fop) * 4)
    scr_bytes = tm * Fp * 4 + 2 * tm * (Hp + Fop) * 4 + 2 * tm * Fop * out_itm
    budget = max(cap - wgt_bytes - scr_bytes - (4 << 20), 4 << 20)

    # keep x fully VMEM-resident when it fits -> removes the per-row-tile x re-fetch
    x_res_bytes = 2 * _round_up(Nal, tm) * Fp * itm
    x_resident = (x_res_bytes <= budget // 2) if resident_x is None else bool(resident_x)

    # budget-aware K tile: spend the remaining VMEM on a long, contiguous A slab
    a_budget = budget - (x_res_bytes if x_resident else 0)
    per_tk = 2 * tm * a_itm + (0 if x_resident else 2 * Fp * itm)
    max_tk = max(LANE, (a_budget // max(per_tk, 1)) // LANE * LANE)
    tile_k_eff = max(LANE, min(tile_k, max_tk))

    Npad = _round_up(Nal, tm)
    if Npad <= tile_k_eff:
        tk = Npad                                       # single K step; block = full dim
    else:
        tk_align = (LANE * tm) // math.gcd(LANE, tm)    # lcm(128, tm)
        tk = _round_up(min(tile_k_eff, Npad), tk_align)
        Npad = _round_up(Npad, tk)
    grid = (Npad // tm, Npad // tk)

    # ---- glue (plain JAX): remove self loops, build padded adjacency directly in
    #      the low-precision storage dtype (no f32 intermediate) ----
    row, col = edge_index[0], edge_index[1]
    keep = (row != col)                                  # remove_self_loops
    A = jnp.zeros((Npad, Npad), a_dtype).at[row, col].add(keep.astype(a_dtype))

    xp = jnp.pad(x, ((0, Npad - N), (0, Fp - F))).astype(compute_dtype)
    w1p = jnp.pad(w1, ((0, Fp - F), (0, Hp - H))).astype(compute_dtype)
    w2p = jnp.pad(w2, ((0, Hp - H), (0, Fop - Fo))).astype(compute_dtype)
    b1p = jnp.pad(b1, (0, Hp - H)).reshape(1, Hp).astype(jnp.float32)
    b2p = jnp.pad(b2, (0, Fop - Fo)).reshape(1, Fop).astype(jnp.float32)
    eps_arr = jnp.full((1, 1), eps, dtype=jnp.float32)

    # ---- explicit VMEM request + cost estimate ----
    a_block = 2 * tm * tk * a_itm
    x_blocks = x_res_bytes if x_resident else 2 * (tk * Fp + tm * Fp) * itm
    needed = wgt_bytes + scr_bytes + a_block + x_blocks + (4 << 20)
    vmem_limit = int(min(cap, max(needed, 32 << 20)))

    flops = 2 * (Npad * Npad * Fp + Npad * Fp * Hp + Npad * Hp * Fop)
    x_refetch = 1 if x_resident else grid[0]
    bytes_accessed = (Npad * Npad * a_itm
                      + (x_refetch + 1) * Npad * Fp * itm
                      + (Fp * Hp + Hp * Fop) * itm + (Hp + Fop) * 4
                      + Npad * Fop * out_itm)

    common_specs = [
        pl.BlockSpec((Fp, Hp), lambda i, k: (0, 0)),     # W1 (resident)
        pl.BlockSpec((1, Hp), lambda i, k: (0, 0)),      # b1 (resident)
        pl.BlockSpec((Hp, Fop), lambda i, k: (0, 0)),    # W2 (resident)
        pl.BlockSpec((1, Fop), lambda i, k: (0, 0)),     # b2 (resident)
    ]

    if x_resident:
        kernel = functools.partial(gin_kernel_resident, tm=tm, tk=tk)
        in_specs = [
            pl.BlockSpec(memory_space=pltpu.MemorySpace.SMEM),   # eps scalar
            pl.BlockSpec((tm, tk), lambda i, k: (i, k)),         # A row/K tile (int8)
            pl.BlockSpec((Npad, Fp), lambda i, k: (0, 0)),       # x fully resident
        ] + common_specs
        operands = (eps_arr, A, xp, w1p, b1p, w2p, b2p)
    else:
        kernel = gin_kernel_stream
        in_specs = [
            pl.BlockSpec(memory_space=pltpu.MemorySpace.SMEM),   # eps scalar
            pl.BlockSpec((tm, tk), lambda i, k: (i, k)),         # A row/K tile (int8)
            pl.BlockSpec((tk, Fp), lambda i, k: (k, 0)),         # x K-slab (matmul RHS)
            pl.BlockSpec((tm, Fp), lambda i, k: (i, 0)),         # x row tile (eps term)
        ] + common_specs
        operands = (eps_arr, A, xp, xp, w1p, b1p, w2p, b2p)

    out_padded = pl.pallas_call(
        kernel,
        out_shape=jax.ShapeDtypeStruct((Npad, Fop), x.dtype),
        grid=grid,
        in_specs=in_specs,
        out_specs=pl.BlockSpec((tm, Fop), lambda i, k: (i, 0)),
        scratch_shapes=[pltpu.VMEM((tm, Fp), jnp.float32)],      # f32 accumulator
        compiler_params=pltpu.CompilerParams(
            dimension_semantics=("parallel", "arbitrary"),
            vmem_limit_bytes=vmem_limit),
        cost_estimate=pl.CostEstimate(flops=flops, transcendentals=0,
                                      bytes_accessed=bytes_accessed),
    )(*operands)

    return out_padded[:N, :Fo]


def gin_conv_ref(x, edge_index, params, eps=0.0):
    """Pure-JAX reference mirroring the PyTorch forward."""
    w1, b1, w2, b2 = params
    row, col = edge_index[0], edge_index[1]
    keep = row != col
    msgs = jnp.where(keep[:, None], x[col], 0.0)
    agg = jnp.zeros_like(x).at[row].add(msgs)
    out = (1.0 + eps) * x + agg
    h = jnp.maximum(out @ w1 + b1, 0.0)
    return h @ w2 + b2


if __name__ == "__main__":
    key = jax.random.PRNGKey(0)
    N, F, H, Fo, E = 200, 32, 64, 32, 800

    k1, k2, k3, k4, k5, k6, k7 = jax.random.split(key, 7)
    x = jax.random.normal(k1, (N, F), dtype=jnp.float32)
    # random directed edges (some self loops -> exercises removal path)
    row = jax.random.randint(k2, (E,), 0, N, dtype=jnp.int32)
    col = jax.random.randint(k3, (E,), 0, N, dtype=jnp.int32)
    edge_index = jnp.stack([row, col], axis=0)

    # MLP params (Linear(F,H) -> ReLU -> Linear(H,Fo))
    w1 = jax.random.uniform(k4, (F, H), jnp.float32, -1.0 / jnp.sqrt(F), 1.0 / jnp.sqrt(F))
    b1 = jax.random.uniform(k5, (H,), jnp.float32, -1.0 / jnp.sqrt(F), 1.0 / jnp.sqrt(F))
    w2 = jax.random.uniform(k6, (H, Fo), jnp.float32, -1.0 / jnp.sqrt(H), 1.0 / jnp.sqrt(H))
    b2 = jax.random.uniform(k7, (Fo,), jnp.float32, -1.0 / jnp.sqrt(H), 1.0 / jnp.sqrt(H))
    params = (w1, b1, w2, b2)

    eps = 0.0  # GINConv default (non-trainable buffer)

    ref = gin_conv_ref(x, edge_index, params, eps=eps)
    scale = float(jnp.max(jnp.abs(ref))) + 1e-6

    # 1) exact (f32) compute path, small tiles -> exercises multi-K grid + accumulator
    #    on the x-resident kernel (int8 adjacency is exact for 0/1 multiplicities).
    out_f32 = gin_conv(x, edge_index, params, eps=eps,
                       compute_dtype=jnp.float32, tile_m=64, tile_k=64)
    out_f32 = jax.block_until_ready(out_f32)
    assert out_f32.shape == (N, Fo)
    assert jnp.allclose(out_f32, ref, atol=1e-3, rtol=1e-3), "f32 path mismatch vs reference"

    # 2) fast bf16 MXU path (default big tiles, resident x, int8 A)
    out_bf16 = gin_conv(x, edge_index, params, eps=eps, compute_dtype=jnp.bfloat16)
    out_bf16 = jax.block_until_ready(out_bf16)
    assert out_bf16.shape == (N, Fo)
    err = float(jnp.max(jnp.abs(out_bf16 - ref)))
    assert err <= 5e-2 * scale, f"bf16 resident-x path mismatch: max err {err} vs scale {scale}"

    # 3) streamed-x fallback path (forced) -> exercises the second kernel variant
    out_stream = gin_conv(x, edge_index, params, eps=eps,
                          compute_dtype=jnp.bfloat16, tile_m=64, tile_k=128,
                          resident_x=False)
    out_stream = jax.block_until_ready(out_stream)
    assert out_stream.shape == (N, Fo)
    err_s = float(jnp.max(jnp.abs(out_stream - ref)))
    assert err_s <= 5e-2 * scale, f"bf16 streamed-x path mismatch: max err {err_s} vs scale {scale}"

    print("KERNEL_OK")
</pallas_src>

<mosaic_0001>
module attributes {stable_mosaic.version = 11 : i64} {
  func.func @gin_kernel_resident(%arg0: i32, %arg1: i32, %arg2: memref<1x1xf32, #tpu.memory_space<smem>>, %arg3: memref<64x128xi8, #tpu.memory_space<vmem>>, %arg4: memref<256x128xf32, #tpu.memory_space<vmem>>, %arg5: memref<128x128xf32, #tpu.memory_space<vmem>>, %arg6: memref<1x128xf32, #tpu.memory_space<vmem>>, %arg7: memref<128x128xf32, #tpu.memory_space<vmem>>, %arg8: memref<1x128xf32, #tpu.memory_space<vmem>>, %arg9: memref<64x128xf32, #tpu.memory_space<vmem>>, %arg10: memref<64x128xf32, #tpu.memory_space<vmem>>) attributes {dimension_semantics = [#tpu.dimension_semantics<parallel>, #tpu.dimension_semantics<arbitrary>], iteration_bounds = array<i64: 4, 2>, scalar_prefetch = 0 : i64, scratch_operands = 1 : i64, tpu.core_type = #tpu.core_type<tc>, window_params = [{transform_indices = @transform_0, window_bounds = array<i64: 1, 1>}, {transform_indices = @transform_1, window_bounds = array<i64: 64, 128>}, {pipeline_mode = #tpu.pipeline_mode<synchronous>, transform_indices = @transform_2, window_bounds = array<i64: 256, 128>}, {pipeline_mode = #tpu.pipeline_mode<synchronous>, transform_indices = @transform_3, window_bounds = array<i64: 128, 128>}, {pipeline_mode = #tpu.pipeline_mode<synchronous>, transform_indices = @transform_4, window_bounds = array<i64: 1, 128>}, {pipeline_mode = #tpu.pipeline_mode<synchronous>, transform_indices = @transform_5, window_bounds = array<i64: 128, 128>}, {pipeline_mode = #tpu.pipeline_mode<synchronous>, transform_indices = @transform_6, window_bounds = array<i64: 1, 128>}, {transform_indices = @transform_7, window_bounds = array<i64: 64, 128>}]} {
    %c0_i32 = arith.constant 0 : i32
    %0 = arith.cmpi eq, %arg1, %c0_i32 : i32
    %1 = arith.extui %0 : i1 to i32
    %c0_i32_0 = arith.constant 0 : i32
    %2 = arith.cmpi ne, %1, %c0_i32_0 : i32
    scf.if %2 {
      %cst_8 = arith.constant 0.000000e+00 : f32
      %16 = vector.broadcast %cst_8 : f32 to vector<64x128xf32>
      %c0_9 = arith.constant 0 : index
      %c0_10 = arith.constant 0 : index
      %17 = vector.load %arg10[%c0_9, %c0_10] : memref<64x128xf32, #tpu.memory_space<vmem>>, vector<64x128xf32>
      tpu.vector_store %arg10[%c0_9, %c0_10], %16 {strides = array<i32>} : memref<64x128xf32, #tpu.memory_space<vmem>>, vector<64x128xf32>,
    } else {
    }
    %c0 = arith.constant 0 : index
    %c0_1 = arith.constant 0 : index
    %3 = vector.load %arg3[%c0, %c0_1] : memref<64x128xi8, #tpu.memory_space<vmem>>, vector<64x128xi8>
    %4 = arith.sitofp %3 : vector<64x128xi8> to vector<64x128xf32>
    %c128_i32 = arith.constant 128 : i32
    %5 = arith.muli %arg1, %c128_i32 : i32
    %6 = tpu.assume_multiple %5, 128 : i32
    %7 = arith.index_cast %6 : i32 to index
    %c0_2 = arith.constant 0 : index
    %8 = vector.load %arg4[%7, %c0_2] : memref<256x128xf32, #tpu.memory_space<vmem>>, vector<128x128xf32>
    %c0_3 = arith.constant 0 : index
    %c0_4 = arith.constant 0 : index
    %9 = vector.load %arg10[%c0_3, %c0_4] : memref<64x128xf32, #tpu.memory_space<vmem>>, vector<64x128xf32>
    %cst = arith.constant dense<0.000000e+00> : vector<64x128xf32>
    %10 = tpu.matmul %4, %8, %cst {dimension_numbers = #tpu.dot_dimension_numbers<[1], [0], [0], [1], [0, 0, 1, 1], [], []>} : vector<64x128xf32>, vector<128x128xf32>, vector<64x128xf32> -> vector<64x128xf32>
    %11 = arith.addf %9, %10 : vector<64x128xf32>
    %c0_5 = arith.constant 0 : index
    %c0_6 = arith.constant 0 : index
    %12 = vector.load %arg10[%c0_5, %c0_6] : memref<64x128xf32, #tpu.memory_space<vmem>>, vector<64x128xf32>
    tpu.vector_store %arg10[%c0_5, %c0_6], %11 {strides = array<i32>} : memref<64x128xf32, #tpu.memory_space<vmem>>, vector<64x128xf32>,
    %c1_i32 = arith.constant 1 : i32
    %13 = arith.cmpi eq, %arg1, %c1_i32 : i32
    %14 = arith.extui %13 : i1 to i32
    %c0_i32_7 = arith.constant 0 : i32
    %15 = arith.cmpi ne, %14, %c0_i32_7 : i32
    scf.if %15 {
      %c0_8 = arith.constant 0 : index
      %c0_9 = arith.constant 0 : index
      %16 = memref.load %arg2[%c0_8, %c0_9] : memref<1x1xf32, #tpu.memory_space<smem>>
      %c64_i32 = arith.constant 64 : i32
      %17 = arith.muli %arg0, %c64_i32 : i32
      %18 = tpu.assume_multiple %17, 64 : i32
      %19 = arith.index_cast %18 : i32 to index
      %c0_10 = arith.constant 0 : index
      %20 = vector.load %arg4[%19, %c0_10] : memref<256x128xf32, #tpu.memory_space<vmem>>, vector<64x128xf32>
      %cst_11 = arith.constant 1.000000e+00 : f32
      %21 = arith.addf %cst_11, %16 : f32
      %22 = vector.broadcast %21 : f32 to vector<64x128xf32>
      %23 = arith.mulf %22, %20 : vector<64x128xf32>
      %c0_12 = arith.constant 0 : index
      %c0_13 = arith.constant 0 : index
      %24 = vector.load %arg10[%c0_12, %c0_13] : memref<64x128xf32, #tpu.memory_space<vmem>>, vector<64x128xf32>
      %25 = arith.addf %23, %24 : vector<64x128xf32>
      %c0_14 = arith.constant 0 : index
      %c0_15 = arith.constant 0 : index
      %26 = vector.load %arg5[%c0_14, %c0_15] : memref<128x128xf32, #tpu.memory_space<vmem>>, vector<128x128xf32>
      %cst_16 = arith.constant dense<0.000000e+00> : vector<64x128xf32>
      %27 = tpu.matmul %25, %26, %cst_16 {dimension_numbers = #tpu.dot_dimension_numbers<[1], [0], [0], [1], [0, 0, 1, 1], [], []>} : vector<64x128xf32>, vector<128x128xf32>, vector<64x128xf32> -> vector<64x128xf32>
      %c0_17 = arith.constant 0 : index
      %c0_18 = arith.constant 0 : index
      %28 = vector.load %arg6[%c0_17, %c0_18] : memref<1x128xf32, #tpu.memory_space<vmem>>, vector<1x128xf32>
      %29 = vector.broadcast %28 : vector<1x128xf32> to vector<64x128xf32>
      %30 = arith.addf %27, %29 : vector<64x128xf32>
      %cst_19 = arith.constant 0.000000e+00 : f32
      %31 = vector.broadcast %cst_19 : f32 to vector<64x128xf32>
      %32 = arith.maximumf %30, %31 : vector<64x128xf32>
      %c0_20 = arith.constant 0 : index
      %c0_21 = arith.constant 0 : index
      %33 = vector.load %arg7[%c0_20, %c0_21] : memref<128x128xf32, #tpu.memory_space<vmem>>, vector<128x128xf32>
      %cst_22 = arith.constant dense<0.000000e+00> : vector<64x128xf32>
      %34 = tpu.matmul %32, %33, %cst_22 {dimension_numbers = #tpu.dot_dimension_numbers<[1], [0], [0], [1], [0, 0, 1, 1], [], []>} : vector<64x128xf32>, vector<128x128xf32>, vector<64x128xf32> -> vector<64x128xf32>
      %c0_23 = arith.constant 0 : index
      %c0_24 = arith.constant 0 : index
      %35 = vector.load %arg8[%c0_23, %c0_24] : memref<1x128xf32, #tpu.memory_space<vmem>>, vector<1x128xf32>
      %36 = vector.broadcast %35 : vector<1x128xf32> to vector<64x128xf32>
      %37 = arith.addf %34, %36 : vector<64x128xf32>
      %c0_25 = arith.constant 0 : index
      %c0_26 = arith.constant 0 : index
      %38 = vector.load %arg9[%c0_25, %c0_26] : memref<64x128xf32, #tpu.memory_space<vmem>>, vector<64x128xf32>
      tpu.vector_store %arg9[%c0_25, %c0_26], %37 {strides = array<i32>} : memref<64x128xf32, #tpu.memory_space<vmem>>, vector<64x128xf32>,
    } else {
    }
    return
  }
  func.func @transform_0(%arg0: i32, %arg1: i32) -> (i32, i32) {
    %c0_i32 = arith.constant 0 : i32
    %c0_i32_0 = arith.constant 0 : i32
    %c0_i32_1 = arith.constant 0 : i32
    return %c0_i32, %c0_i32_0 : i32, i32
  }
  func.func @transform_1(%arg0: i32, %arg1: i32) -> (i32, i32) {
    %c0_i32 = arith.constant 0 : i32
    return %arg0, %arg1 : i32, i32
  }
  func.func @transform_2(%arg0: i32, %arg1: i32) -> (i32, i32) {
    %c0_i32 = arith.constant 0 : i32
    %c0_i32_0 = arith.constant 0 : i32
    %c0_i32_1 = arith.constant 0 : i32
    return %c0_i32, %c0_i32_0 : i32, i32
  }
  func.func @transform_3(%arg0: i32, %arg1: i32) -> (i32, i32) {
    %c0_i32 = arith.constant 0 : i32
    %c0_i32_0 = arith.constant 0 : i32
    %c0_i32_1 = arith.constant 0 : i32
    return %c0_i32, %c0_i32_0 : i32, i32
  }
  func.func @transform_4(%arg0: i32, %arg1: i32) -> (i32, i32) {
    %c0_i32 = arith.constant 0 : i32
    %c0_i32_0 = arith.constant 0 : i32
    %c0_i32_1 = arith.constant 0 : i32
    return %c0_i32, %c0_i32_0 : i32, i32
  }
  func.func @transform_5(%arg0: i32, %arg1: i32) -> (i32, i32) {
    %c0_i32 = arith.constant 0 : i32
    %c0_i32_0 = arith.constant 0 : i32
    %c0_i32_1 = arith.constant 0 : i32
    return %c0_i32, %c0_i32_0 : i32, i32
  }
  func.func @transform_6(%arg0: i32, %arg1: i32) -> (i32, i32) {
    %c0_i32 = arith.constant 0 : i32
    %c0_i32_0 = arith.constant 0 : i32
    %c0_i32_1 = arith.constant 0 : i32
    return %c0_i32, %c0_i32_0 : i32, i32
  }
  func.func @transform_7(%arg0: i32, %arg1: i32) -> (i32, i32) {
    %c0_i32 = arith.constant 0 : i32
    %c0_i32_0 = arith.constant 0 : i32
    return %arg0, %c0_i32 : i32, i32
  }
}

</mosaic_0001>

<bundles_post_ra>
// kernel: tpu_custom_call.1
= control target key start
LH: loop header
LB: loop body
LE: loop exit
PB: predicated region body
PF: predicated region fallthrough
CT: control target
= control target key end

     0   :  { %s2008_s0 = inlined_call_operand.<no memory space> [shape: f32[1,1], index: 0, kind: input, shape index: {}]   ;;  %s2009_s1 = inlined_call_operand.hbm [shape: s8[256,256], index: 1, kind: input, shape index: {}]   ;;  %s2010_s2 = inlined_call_operand.hbm [shape: f32[256,128], index: 2, kind: input, shape index: {}]   ;;  %s2011_s3 = inlined_call_operand.hbm [shape: f32[128,128], index: 3, kind: input, shape index: {}]   ;;  %s2012_s4 = inlined_call_operand.vmem [shape: f32[1,128], index: 4, kind: input, shape index: {}]   ;;  %s2013_s5 = inlined_call_operand.hbm [shape: f32[128,128], index: 5, kind: input, shape index: {}]   ;;  %s2014_s6 = inlined_call_operand.vmem [shape: f32[1,128], index: 6, kind: input, shape index: {}]   ;;  %s2015_s7 = inlined_call_operand.hbm [shape: f32[256,128], index: 7, kind: output, shape index: {}]  }
   0x1   :  { %2030 = sst [smem:[#allocation23_spill]] %s2010_s2 }
   0x2   :  { %2031 = sst [smem:[#allocation24_spill]] %s2011_s3 }
   0x3   :  { %2032 = sst [smem:[#allocation25_spill]] %s2013_s5 }
   0x4   :  { %2033 = sst [smem:[#allocation26_spill]] %s2014_s6 }
   0x5   :  { %2034 = sst [smem:[#allocation27_spill]] %s2015_s7 }
   0x6   :  { %12 = sst [smem:[#allocation3]] %s2008_s0 }
   0x7   :  { %13 = vsyncpa [#allocation5], 0 }
   0x8   :  { %15 = vsyncpa [#allocation5 + $0x1], 0 }
   0x9   :  { %16 = vsyncpa [#allocation8], 0 }
   0xa   :  { %17 = vsyncpa [#allocation11], 0 }
   0xb   :  { %18 = vsyncpa [#allocation6], 0 }
   0xc   :  { %20 = vsyncpa [#allocation6 + $0x1], 0  ;;  %s1678_s26 = smov 0   ;;  %s1680_s27 = smov 0  }
   0xd   :  { %s1682_s28 = smov 0   ;;  %s1684_s29 = smov 0  }
   0xe   :  { %s1686_s30 = smov 0   ;;  %s1688_s8 = smov 0  }
   0xf   :  { %s1690_s9 = smov 0   ;;  %s1692_s0 = smov 0  }
  0x10   :  { %s1694_s10 = smov 0   ;;  %s1696_s11 = smov 0  }
  0x11   :  { %s1698_s12 = smov 0  }
  0x12 LB: > { %2035 = sst [smem:[#allocation17_spill]] %s1582_s26  ;;  %s983_s13 = sadd.s32 4294967295, %s1622_s12   ;;  %s1622_s12 = sphi %s1698_s12, %s26_s12   ;;  %s1618_s11 = sphi %s1696_s11, %s2077_s11   ;;  %s1614_s10 = sphi %s1694_s10, %s2076_s10   ;;  %s1610_s0 = sphi %s1692_s0, %s2075_s0   ;;  %s1606_s9 = sphi %s1690_s9, %s2074_s9   ;;  %s1602_s8 = sphi %s1688_s8, %s2073_s8   ;;  %s1598_s30 = sphi %s1686_s30, %s2072_s30   ;;  %s1594_s29 = sphi %s1684_s29, %s2071_s29   ;;  %s1590_s28 = sphi %s1682_s28, %s2070_s28   ;;  %s1586_s27 = sphi %s1680_s27, %s2069_s27   ;;  %s1582_s26 = sphi %s1678_s26, %s2068_s26  }
  0x13   : > { %2036 = sst [smem:[#allocation18_spill]] %s1622_s12  ;;  %s984_s14 = sadd.s32 4294967294, %s1622_s12  }
  0x14   : > { %p75_p0 = scmp.ne.s32.totalorder %s1602_s8, %s1598_s30  ;;  %p76_p1 = scmp.eq.s32.totalorder %s1622_s12, 0 }
  0x15   : > { %p81_p2 = scmp.ne.s32.totalorder %s1598_s30, %s1594_s29  ;;  %p1738_p3 = scmp.eq.s32.totalorder %s983_s13, 0 }
  0x16   : > { %p1743_p4 = por %p76_p1, %p75_p0  ;;  %p209_p5 = scmp.ne.s32.totalorder %s1590_s28, %s1586_s27 }
  0x17   : > { %s2037_s16 = scalar_select %p1738_p3, 1, 0 }
  0x18   : > { %p1751_p6 = por %p1738_p3, %p81_p2  ;;  %p210_p7 = scmp.eq.s32.totalorder %s983_s13, 7 }
  0x19   : > { %p215_p8 = scmp.ne.s32.totalorder %s1586_s27, %s1582_s26  ;;  %p216_p9 = scmp.eq.s32.totalorder %s984_s14, 7 }
  0x1a   : > { %p1757_p10 = por %p210_p7, %p209_p5  ;;  %p985_p11 = scmp.ge.s32.totalorder %s1622_s12, 1 }
  0x1b   : > { %p1762_p12 = por %p216_p9, %p215_p8  ;;  %p223_p13 = scmp.lt.s32.totalorder %s1622_s12, 9 }
  0x1c   : > { %s2040_s20 = scalar_select %p1757_p10, 1, 0 }
  0x1d   : > { %s2042_s21 = scalar_select %p1762_p12, 1, 0 }
  0x1e   : > { %2041 = sst [smem:[#allocation19_spill]] %s2040_s20  ;;  %p1767_p0 = pnand %p985_p11, %p223_p13 }
  0x1f   : > { %2043 = sst [smem:[#allocation20_spill]] %s2042_s21  ;;  %s1624_s23 = smov [#allocation7]  }
  0x20   : > { %s238_s24 = sshll.u32 %s1624_s23, 4  ;;  %p1265_p1 = pneg %p1767_p0  ;;  %s239_s24 = int_to_ptr.vmem [resolvable:$true] %s238_s24 }
  0x21   : > { %p1286_p2 = scmp.lt.s32.totalorder %s1622_s12, 8  ;;  %s1625_s13 = smov [#allocation9]  }
  0x22   : > { %p1776_p5 = pnand %p1265_p1, %p1738_p3  ;;  %s251_s14 = sshll.u32 %s1625_s13, 4  ;;  %s252_s14 = int_to_ptr.vmem [resolvable:$true] %s251_s14 }
  0x23   : > { %p1782_p7 = pnand %p1286_p2, %p1743_p4  ;;  %s1399_s23 = scalar_lea.vmem %s239_s24, 4096 }
  0x24   : > { %p1390_p8 = pneg %p1776_p5  ;;  %p1400_p9 = scmp.ne.s32.totalorder %s239_s24, %s1399_s23 }
  0x25   : > { %p1407_p1 = scmp.lt.s32.totalorder %s239_s24, %s239_s24  ;;  %p1408_p12 = scmp.lt.s32.totalorder %s1399_s23, %s1399_s23 }
  0x26   : > { %p1402_p11 = pnand %p1400_p9, %p1390_p8 }
  0x27   : > { %p1409_p10 = por %p1408_p12, %p1407_p1 }
  0x28   : > { %p1403_p13 = pneg %p1402_p11 }
  0x2a   : > { %p1410_p3 = pnand %p1409_p10, %p1403_p13 }
  0x2c   : > { %1413 = shalt.err (!%p1410_p3)
}
  0x2d   : > { %s2021_s18 = smov 128   ;;  %s2022_s15 = smov 8  }
  0x2e   : > { %s2047_s2 = sld [smem:[#allocation23_spill]]  ;;  %s1425_s21 = scalar_lea.vmem %s252_s14, 2048 }
  0x2f   : > { %p1426_p4 = scmp.ne.s32.totalorder %s252_s14, %s1425_s21  ;;  %p1433_p10 = scmp.lt.s32.totalorder %s252_s14, %s252_s14 }
  0x30   : > { %p1434_p3 = scmp.lt.s32.totalorder %s1425_s21, %s1425_s21 }
  0x31   : > { %p1428_p2 = pnand %p1426_p4, %p1390_p8 }
  0x32   : > { %p1435_p9 = por %p1434_p3, %p1433_p10 }
  0x33   : > { %p1429_p12 = pneg %p1428_p2 }
  0x34   : > { %1268 = dma.hbm_to_vmem [thread:$0]  (!%p1776_p5), %s2047_s2, 4096, %s239_s24, [#allocation8], %s2021_s18, %s2021_s18, %s2022_s15  }
  0x35   : > { %p1436_p11 = pnand %p1435_p9, %p1429_p12 }
  0x37   : > { %1439 = shalt.err (!%p1436_p11)
}
  0x38   : > { %s2048_s3 = sld [smem:[#allocation24_spill]]  ;;  %s1628_s17 = smov [#allocation10]  }
  0x39   : > { %s267_s24 = sshll.u32 %s1628_s17, 4  ;;  %s268_s24 = int_to_ptr.vmem [resolvable:$true] %s267_s24 }
  0x3a   : > { %s1451_s13 = scalar_lea.vmem %s268_s24, 2048  ;;  %p1459_p2 = scmp.lt.s32.totalorder %s268_s24, %s268_s24 }
  0x3b   : > { %p1452_p13 = scmp.ne.s32.totalorder %s268_s24, %s1451_s13  ;;  %p1460_p12 = scmp.lt.s32.totalorder %s1451_s13, %s1451_s13 }
  0x3d   : > { %p1454_p1 = pnand %p1452_p13, %p1390_p8  ;;  %p1461_p10 = por %p1460_p12, %p1459_p2 }
  0x3e   : > { %1271 = dma.hbm_to_vmem [thread:$0]  (!%p1776_p5), %s2048_s3, 2048, %s252_s14, [#allocation8], %s2021_s18, %s2021_s18, %s2022_s15  }
  0x3f   : > { %p1455_p4 = pneg %p1454_p1 }
  0x41   : > { %p1462_p3 = pnand %p1461_p10, %p1455_p4 }
  0x43   : > { %1465 = shalt.err (!%p1462_p3)
}
  0x44   : > { %s2049_s5 = sld [smem:[#allocation25_spill]]  ;;  %s35_s14 = sadd.s32 1, %s1614_s10 }
  0x45   : > { %s38_s23 = sadd.s32 1, %s1618_s11  ;;  %p36_p8 = scmp.ge.s32.totalorder %s35_s14, 2 }
  0x46   : > { %s284_s17 = sand.u32 1, %s1602_s8   ;;  %s1011_s26 = sshll.u32 %s1618_s11, 2 }
  0x47   : > { %s990_s25 = sshll.u32 %s284_s17, 4  ;;  %s2079_s14 = smov (%p36_p8, %s35_s14), 0 }
  0x48   : > { %2050 = sst [smem:[#allocation21_spill]] %s2079_s14  ;;  %s2081_s23 = smov (!%p36_p8, %s38_s23), %s1618_s11 }
  0x49   : > { %s64_s13 = ssub.s32 %s1614_s10, %s2079_s14  ;;  %p40_p9 = scmp.ge.s32.totalorder %s2081_s23, 4 }
  0x4a   : > { %1274 = dma.hbm_to_vmem [thread:$0]  (!%p1776_p5), %s2049_s5, 2048, %s268_s24, [#allocation11], %s2021_s18, %s2021_s18, %s2022_s15  }
  0x4b   : > { %s294_s21 = sadd.s32 %s1614_s10, %s1011_s26  ;;  %s288_s24 = scalar_lea.vmem [#allocation4], %s990_s25 }
  0x4c   : > { %s297_s18 = sshll.u32 %s288_s24, 4  ;;  %s2083_s23 = smov (%p40_p9, %s2081_s23), 0  ;;  %s298_s18 = int_to_ptr.vmem [resolvable:$true] %s297_s18 }
  0x4d   : > { %2051 = sst [smem:[#allocation22_spill]] %s2083_s23  ;;  %s993_s15 = sshll.u32 %s294_s21, 7 }
  0x4e   : > { %s63_s2 = ssub.s32 %s1618_s11, %s2083_s23  ;;  %s296_s12 = scalar_lea.hbm %s2009_s1, %s993_s15 }
  0x4f   : > { %s65_s7 = sor.u32 %s64_s13, %s63_s2  ;;  %p197_p5 = scmp.eq.s32.totalorder %s63_s2, 0 }
  0x50   : > { %p66_p11 = scmp.eq.s32.totalorder %s65_s7, 0  ;;  %s2052_s14 = sadd.s32 1, %s1590_s28 }
  0x51   : > { %s1841_s20 = scalar_select %p197_p5, %s1590_s28, %s2052_s14  }
  0x52   : > { %s2053_s6 = sadd.s32 1, %s1602_s8  ;;  %s285_s25 = scalar_lea.sflag [#allocation5], %s284_s17 }
  0x53   : > { %s1846_s26 = scalar_select %p66_p11, %s1602_s8, %s2053_s6  }
  0x54   : > { %p1468_p13 = pneg %p1782_p7  ;;  %s1479_s24 = scalar_lea.vmem %s298_s18, 256 }
  0x55   : > { %p1480_p1 = scmp.ne.s32.totalorder %s298_s18, %s1479_s24  ;;  %s1629_s21 = smov [#allocation4]  }
  0x56   : > { %s1484_s23 = sshll.u32 %s1629_s21, 4  ;;  %s1485_s23 = int_to_ptr.vmem [resolvable:$false] %s1484_s23 }
  0x57   : > { %p1482_p4 = pnand %p1480_p1, %p1468_p13  ;;  %s1486_s3 = scalar_lea.vmem %s1485_s23, 512 }
  0x58   : > { %p1487_p12 = scmp.lt.s32.totalorder %s298_s18, %s1485_s23  ;;  %p1488_p10 = scmp.lt.s32.totalorder %s1486_s3, %s1479_s24 }
  0x59   : > { %p1483_p2 = pneg %p1482_p4 }
  0x5a   : > { %p1489_p3 = por %p1488_p10, %p1487_p12 }
  0x5c   : > { %p1490_p8 = pnand %p1489_p3, %p1483_p2 }
  0x5e   : > { %1493 = shalt.err (!%p1490_p8)
}
  0x5f   : > { %s1630_s2 = smov 256   ;;  %s2054_s5 = smov 8  }
  0x60   : > { %s2055_s6 = smov 128   ;;  %309 = sbr.rel (%p1767_p0) target bundleno = 827 (0x33b), region = 48 }
  0x61   : > { %1278 = dma.hbm_to_vmem [thread:$0]  (!%p1782_p7), %s296_s12, 256, %s298_s18, %s285_s25, %s1630_s2, %s2055_s6, %s2054_s5  }
  0x62   : > { %s311_s7 = sand.u32 (!%p1767_p0), 1, %s1598_s30  }
  0x63   : > { %s1857_s15 = sshll.u32 (!%p1767_p0), %s311_s7, 4  ;;  %s312_s14 = scalar_lea.sflag (!%p1767_p0), [#allocation5], %s311_s7 }
  0x64   : > { %s315_s23 = scalar_lea.vmem (!%p1767_p0), [#allocation4], %s1857_s15 }
  0x65   : > { %1565 = dma.done.wait (%p1751_p6), %s312_s14, 256  }
  0x66   : > { %1567 = vsyncadd (%p1751_p6), %s312_s14, 4294967040  ;;  %p2056_p9 = scmp.ne.s32.totalorder %s2037_s16, 0 }
  0x68   : > { %1569 = dma.done.wait (%p2056_p9), [#allocation8], 6144  }
  0x69   : > { %1571 = vsyncadd (%p2056_p9), [#allocation8], 4294961152 }
  0x6a   : > { %1573 = dma.done.wait (%p2056_p9), [#allocation11], 2048  }
  0x6b   : > { %1575 = vsyncadd (%p2056_p9), [#allocation11], 4294965248  ;;  %s355_s12 = sand.u32 1, %s1586_s27   ;;  %p1000_p6 = scmp.ne.s32.totalorder %s1606_s9, 0 }
  0x6c   : > { %s999_s22 = sshll.u32 %s355_s12, 6 }
  0x6d   : > { %s1875_s29 = scalar_lea.vmem [#allocation12], %s999_s22  ;;  %363 = sbr.rel (%p1000_p6) target bundleno = 119 (0x77), region = 68 }
  0x72   : > { %v1631_v0 = vmov 0.0  }
  0x73   : > { %364 = vst [vmem:[#allocation2 + $0x30] sm:$0xff] %v1631_v0  ;;  %365 = vst [vmem:[#allocation2] sm:$0xff] %v1631_v0 }
  0x74   : > { %366 = vst [vmem:[#allocation2 + $0x18] sm:$0xff] %v1631_v0  ;;  %367 = vst [vmem:[#allocation2 + $0x10] sm:$0xff] %v1631_v0 }
  0x75   : > { %368 = vst [vmem:[#allocation2 + $0x8] sm:$0xff] %v1631_v0  ;;  %369 = vst [vmem:[#allocation2 + $0x20] sm:$0xff] %v1631_v0 }
  0x76   : > { %370 = vst [vmem:[#allocation2 + $0x28] sm:$0xff] %v1631_v0  ;;  %371 = vst [vmem:[#allocation2 + $0x38] sm:$0xff] %v1631_v0 }
  0x77 PF: > { %s1001_s16 = sshll.u32 %s1606_s9, 7  ;;  %v372_v14 = vld [vmem:[%s315_s23] sm:$0xff]  ;;  %v373_v15 = vld [vmem:[%s315_s23 + $0x8] sm:$0xff]  ;;  %p1002_p0 = scmp.ne.s32.totalorder %s1606_s9, 1 }
  0x78   : > { %s1879_s19 = scalar_lea.vmem [#allocation7], %s1001_s16  ;;  %v374_v17 = vunpack.c.0.s8 %v372_v14  ;;  %v378_v18 = vunpack.c.0.s8 %v373_v15  ;;  %v375_v20 = vunpack.c.1.s8 %v372_v14  ;;  %v379_v21 = vunpack.c.1.s8 %v373_v15  ;;  %s541_s18 = sld [smem:[#allocation3]] (!%p1002_p0) }
  0x79   : > { %v407_v1 = vld [vmem:[%s1879_s19 + $0x78] sm:$0xff]  ;;  %v406_v2 = vld [vmem:[%s1879_s19 + $0x70] sm:$0xff]  ;;  %v405_v3 = vld [vmem:[%s1879_s19 + $0x68] sm:$0xff]  ;;  %v376_v22 = vunpack.c.2.s8 %v372_v14  ;;  %v380_v23 = vunpack.c.2.s8 %v373_v15  ;;  %v377_v29 = vunpack.c.3.s8 %v372_v14  ;;  %v381_v30 = vunpack.c.3.s8 %v373_v15  ;;  %s1003_s17 = sshll.u32 (!%p1002_p0), %s1610_s0, 6  ;;  %s2057_s2 = sld [smem:[#allocation26_spill]] (!%p1002_p0) }
  0x7a   : > { %1085 = vmatprep.subr.mxu0 %v407_v1  ;;  %1217 = vmatprep.subr.mxu1 %v407_v1  ;;  %v404_v4 = vld [vmem:[%s1879_s19 + $0x60] sm:$0xff]  ;;  %v403_v5 = vld [vmem:[%s1879_s19 + $0x58] sm:$0xff]  ;;  %v402_v6 = vld [vmem:[%s1879_s19 + $0x50] sm:$0xff]  ;;  %v382_v25 = vcvt.s32.f32 %v374_v17  ;;  %v386_v26 = vcvt.s32.f32 %v378_v18  ;;  %v383_v27 = vcvt.s32.f32 %v375_v20  ;;  %v387_v28 = vcvt.s32.f32 %v379_v21  ;;  %s1903_s13 = scalar_lea.vmem (!%p1002_p0), [#allocation7], %s1003_s17 }
  0x7b   : > { %1086 = vmatpush3.msra.mxu0 %v407_v1  ;;  %1233 = vmatpush3.msra.mxu1 %v407_v1  ;;  %v401_v7 = vld [vmem:[%s1879_s19 + $0x48] sm:$0xff]  ;;  %v400_v8 = vld [vmem:[%s1879_s19 + $0x40] sm:$0xff]  ;;  %v399_v9 = vld [vmem:[%s1879_s19 + $0x38] sm:$0xff]  ;;  %v384_v31 = vcvt.s32.f32 %v376_v22  ;;  %v388_v32 = vcvt.s32.f32 %v380_v23  ;;  %v385_v33 = vcvt.s32.f32 %v377_v29  ;;  %v389_v34 = vcvt.s32.f32 %v381_v30 }
  0x7c   : > { %1087 = vmatprep.subr.mxu0 %v406_v2  ;;  %1218 = vmatprep.subr.mxu1 %v406_v2  ;;  %v398_v10 = vld [vmem:[%s1879_s19 + $0x30] sm:$0xff]  ;;  %v397_v11 = vld [vmem:[%s1879_s19 + $0x28] sm:$0xff]  ;;  %v396_v12 = vld [vmem:[%s1879_s19 + $0x20] sm:$0xff] }
  0x7d   : > { %1088 = vmatpush3.msra.mxu0 %v406_v2  ;;  %1234 = vmatpush3.msra.mxu1 %v406_v2  ;;  %v395_v13 = vld [vmem:[%s1879_s19 + $0x18] sm:$0xff]  ;;  %v394_v16 = vld [vmem:[%s1879_s19 + $0x10] sm:$0xff]  ;;  %v393_v19 = vld [vmem:[%s1879_s19 + $0x8] sm:$0xff] }
  0x7e   : > { %1089 = vmatprep.subr.mxu0 %v405_v3  ;;  %1219 = vmatprep.subr.mxu1 %v405_v3  ;;  %v392_v24 = vld [vmem:[%s1879_s19] sm:$0xff]  ;;  %v408_v39 = vld [vmem:[#allocation2 + $0x30] sm:$0xff]  ;;  %v412_v40 = vld [vmem:[#allocation2 + $0x8] sm:$0xff]  ;;  %s552_s9 = sadd.f32 (!%p1002_p0), 1.0, %s541_s18 }
  0x7f   : > { %1090 = vmatpush3.msra.mxu0 %v405_v3  ;;  %1235 = vmatpush3.msra.mxu1 %v405_v3  ;;  %v409_v35 = vld [vmem:[#allocation2] sm:$0xff]  ;;  %v411_v45 = vld [vmem:[#allocation2 + $0x10] sm:$0xff]  ;;  %v415_v46 = vld [vmem:[#allocation2 + $0x38] sm:$0xff] }
  0x80   : > { %1091 = vmatprep.subr.mxu0 %v404_v4  ;;  %1220 = vmatprep.subr.mxu1 %v404_v4  ;;  %v413_v36 = vld [vmem:[#allocation2 + $0x20] sm:$0xff]  ;;  %v410_v51 = vld [vmem:[#allocation2 + $0x18] sm:$0xff]  ;;  %v414_v52 = vld [vmem:[#allocation2 + $0x28] sm:$0xff] }
  0x81   : > { %1092 = vmatpush3.msra.mxu0 %v404_v4  ;;  %1236 = vmatpush3.msra.mxu1 %v404_v4 }
  0x82   : > { %1093 = vmatprep.subr.mxu0 %v403_v5  ;;  %1221 = vmatprep.subr.mxu1 %v403_v5 }
  0x83   : > { %1094 = vmatpush3.msra.mxu0 %v403_v5  ;;  %1237 = vmatpush3.msra.mxu1 %v403_v5 }
  0x84   : > { %1095 = vmatprep.subr.mxu0 %v402_v6  ;;  %1222 = vmatprep.subr.mxu1 %v402_v6 }
  0x85   : > { %1096 = vmatpush3.msra.mxu0 %v402_v6  ;;  %1238 = vmatpush3.msra.mxu1 %v402_v6 }
  0x86   : > { %1097 = vmatprep.subr.mxu0 %v401_v7  ;;  %1223 = vmatprep.subr.mxu1 %v401_v7 }
  0x87   : > { %1098 = vmatpush3.msra.mxu0 %v401_v7  ;;  %1239 = vmatpush3.msra.mxu1 %v401_v7 }
  0x88   : > { %1099 = vmatprep.subr.mxu0 %v400_v8  ;;  %1224 = vmatprep.subr.mxu1 %v400_v8 }
  0x89   : > { %1100 = vmatpush3.msra.mxu0 %v400_v8  ;;  %1240 = vmatpush3.msra.mxu1 %v400_v8 }
  0x8a   : > { %1101 = vmatprep.subr.mxu0 %v399_v9  ;;  %1225 = vmatprep.subr.mxu1 %v399_v9 }
  0x8b   : > { %1102 = vmatpush3.msra.mxu0 %v399_v9  ;;  %1241 = vmatpush3.msra.mxu1 %v399_v9 }
  0x8c   : > { %1103 = vmatprep.subr.mxu0 %v398_v10  ;;  %1226 = vmatprep.subr.mxu1 %v398_v10 }
  0x8d   : > { %1104 = vmatpush3.msra.mxu0 %v398_v10  ;;  %1242 = vmatpush3.msra.mxu1 %v398_v10 }
  0x8e   : > { %1105 = vmatprep.subr.mxu0 %v397_v11  ;;  %1227 = vmatprep.subr.mxu1 %v397_v11 }
  0x8f   : > { %1106 = vmatpush3.msra.mxu0 %v397_v11  ;;  %1243 = vmatpush3.msra.mxu1 %v397_v11 }
  0x90   : > { %1107 = vmatprep.subr.mxu0 %v396_v12  ;;  %1228 = vmatprep.subr.mxu1 %v396_v12 }
  0x91   : > { %1108 = vmatpush3.msra.mxu0 %v396_v12  ;;  %1244 = vmatpush3.msra.mxu1 %v396_v12 }
  0x92   : > { %1109 = vmatprep.subr.mxu0 %v395_v13  ;;  %1229 = vmatprep.subr.mxu1 %v395_v13 }
  0x93   : > { %1110 = vmatpush3.msra.mxu0 %v395_v13  ;;  %1245 = vmatpush3.msra.mxu1 %v395_v13 }
  0x94   : > { %1111 = vmatprep.subr.mxu0 %v394_v16  ;;  %1230 = vmatprep.subr.mxu1 %v394_v16 }
  0x95   : > { %1112 = vmatpush3.msra.mxu0 %v394_v16  ;;  %1246 = vmatpush3.msra.mxu1 %v394_v16 }
  0x96   : > { %1113 = vmatprep.subr.mxu0 %v393_v19  ;;  %1231 = vmatprep.subr.mxu1 %v393_v19 }
  0x97   : > { %1114 = vmatpush3.msra.mxu0 %v393_v19  ;;  %1247 = vmatpush3.msra.mxu1 %v393_v19 }
  0x98   : > { %1115 = vmatprep.subr.mxu0 %v392_v24  ;;  %1232 = vmatprep.subr.mxu1 %v392_v24 }
  0x99   : > { %1116 = vmatpush3.msra.mxu0 %v392_v24  ;;  %1248 = vmatpush3.msra.mxu1 %v392_v24 }
  0x9a   : > { %1117 = vmatprep.mubr.f32.mxu0 %v382_v25  ;;  %1123 = vmatprep.mubr.f32.mxu1 %v386_v26 }
  0x9b   : > { %1118 = vmatmul.mubr.f32.vlgmr.msra.gmra.mxu0 %v383_v27  ;;  %1124 = vmatmul.mubr.f32.vlgmr.msra.gmra.mxu1 %v387_v28 }
  0x9c   : > { %1120 = vmatprep.mubr.f32.mxu0 %v384_v31  ;;  %1126 = vmatprep.mubr.f32.mxu1 %v388_v32 }
  0x9f   : > { %1121 = vmatmul.mubr.f32.gmra.mxu0 %v385_v33  ;;  %1127 = vmatmul.mubr.f32.gmra.mxu1 %v389_v34 }
 0x15b   : > { %v1119_v37 = vpop.f32.mrf.mxu0  ;;  %v1125_v38 = vpop.f32.mrf.mxu1 }
 0x15c   : > { %v522_v41 = vadd.f32 %v1119_v37, %v409_v35  ;;  %v526_v42 = vadd.f32 %v1125_v38, %v413_v36 }
 0x15d   : > { %v482_v43 = vpop.f32.mrf.mxu0  ;;  %v502_v44 = vpop.f32.mrf.mxu1 }
 0x15e   : > { %530 = vst [vmem:[#allocation2] sm:$0xff] %v522_v41  ;;  %534 = vst [vmem:[#allocation2 + $0x20] sm:$0xff] %v526_v42  ;;  %v521_v47 = vadd.f32 %v482_v43, %v408_v39  ;;  %v525_v48 = vadd.f32 %v502_v44, %v412_v40 }
 0x15f   : > { %v1122_v49 = vpop.f32.mrf.mxu0  ;;  %v1128_v50 = vpop.f32.mrf.mxu1 }
 0x160   : > { %529 = vst [vmem:[#allocation2 + $0x30] sm:$0xff] %v521_v47  ;;  %533 = vst [vmem:[#allocation2 + $0x8] sm:$0xff] %v525_v48  ;;  %v524_v53 = vadd.f32 %v1122_v49, %v411_v45  ;;  %v528_v54 = vadd.f32 %v1128_v50, %v415_v46  ;;  %540 = sbr.rel (%p1002_p0) target bundleno = 800 (0x320), region = 72 }
 0x161   : > { %v492_v55 = vpop.f32.mrf.mxu0  ;;  %v512_v56 = vpop.f32.mrf.mxu1 }
 0x162   : > { %532 = vst [vmem:[#allocation2 + $0x10] sm:$0xff] %v524_v53  ;;  %536 = vst [vmem:[#allocation2 + $0x38] sm:$0xff] %v528_v54  ;;  %v523_v57 = vadd.f32 %v492_v55, %v410_v51  ;;  %v527_v58 = vadd.f32 %v512_v56, %v414_v52 }
 0x164   : > { %531 = vst [vmem:[#allocation2 + $0x18] sm:$0xff] %v523_v57  ;;  %535 = vst [vmem:[#allocation2 + $0x28] sm:$0xff] %v527_v58 }
 0x165   : > { %v593_v59 = vld [vmem:[#allocation9 + $0x78] sm:$0xff]  ;;  %v592_v60 = vld [vmem:[#allocation9 + $0x70] sm:$0xff]  ;;  %v591_v61 = vld [vmem:[#allocation9 + $0x68] sm:$0xff]  ;;  %v1906_v2 = vstv %s552_s9 }
 0x166   : > { %1129 = vmatprep.subr.mxu0 %v593_v59  ;;  %v590_v62 = vld [vmem:[#allocation9 + $0x60] sm:$0xff]  ;;  %v589_v63 = vld [vmem:[#allocation9 + $0x58] sm:$0xff]  ;;  %v588_v1 = vld [vmem:[#allocation9 + $0x50] sm:$0xff] }
 0x167   : > { %1130 = vmatpush3.msra.mxu0 %v593_v59  ;;  %v544_v0 = vld [vmem:[%s1903_s13] sm:$0xff]  ;;  %v562_v3 = vld [vmem:[#allocation2 + $0x30] sm:$0xff]  ;;  %v587_v5 = vld [vmem:[#allocation9 + $0x48] sm:$0xff] }
 0x168   : > { %1131 = vmatprep.subr.mxu0 %v592_v60  ;;  %v554_v4 = vmul.f32 %v1906_v2, %v544_v0  ;;  %v729_v7 = vld [vmem:[#allocation10 + $0x78] sm:$0xff]  ;;  %v586_v8 = vld [vmem:[#allocation9 + $0x40] sm:$0xff]  ;;  %v728_v9 = vld [vmem:[#allocation10 + $0x70] sm:$0xff] }
 0x169   : > { %1132 = vmatpush3.msra.mxu0 %v592_v60  ;;  %v585_v10 = vld [vmem:[#allocation9 + $0x38] sm:$0xff]  ;;  %1173 = vmatprep.subr.mxu1 %v729_v7  ;;  %v727_v11 = vld [vmem:[#allocation10 + $0x68] sm:$0xff]  ;;  %v584_v12 = vld [vmem:[#allocation9 + $0x30] sm:$0xff] }
 0x16a   : > { %1133 = vmatprep.subr.mxu0 %v591_v61  ;;  %v570_v6 = vadd.f32 %v562_v3, %v554_v4  ;;  %1174 = vmatpush3.msra.mxu1 %v729_v7  ;;  %v726_v13 = vld [vmem:[#allocation10 + $0x60] sm:$0xff]  ;;  %v583_v14 = vld [vmem:[#allocation9 + $0x28] sm:$0xff]  ;;  %v725_v15 = vld [vmem:[#allocation10 + $0x58] sm:$0xff] }
 0x16b   : > { %1134 = vmatpush3.msra.mxu0 %v591_v61  ;;  %1175 = vmatprep.subr.mxu1 %v728_v9  ;;  %v582_v16 = vld [vmem:[#allocation9 + $0x20] sm:$0xff]  ;;  %v724_v17 = vld [vmem:[#allocation10 + $0x50] sm:$0xff]  ;;  %v581_v18 = vld [vmem:[#allocation9 + $0x18] sm:$0xff] }
 0x16c   : > { %1135 = vmatprep.subr.mxu0 %v590_v62  ;;  %1161 = vmatprep.mubr.f32.mxu0 %v570_v6  ;;  %v545_v19 = vld [vmem:[%s1903_s13 + $0x8] sm:$0xff]  ;;  %v546_v20 = vld [vmem:[%s1903_s13 + $0x10] sm:$0xff]  ;;  %v722_v24 = vld [vmem:[#allocation10 + $0x40] sm:$0xff] }
 0x16d   : > { %1136 = vmatpush3.msra.mxu0 %v590_v62  ;;  %1176 = vmatpush3.msra.mxu1 %v728_v9  ;;  %v723_v21 = vld [vmem:[#allocation10 + $0x48] sm:$0xff]  ;;  %v580_v22 = vld [vmem:[#allocation9 + $0x10] sm:$0xff]  ;;  %v555_v23 = vmul.f32 %v1906_v2, %v545_v19  ;;  %v563_v26 = vld [vmem:[#allocation2] sm:$0xff]  ;;  %v556_v27 = vmul.f32 %v1906_v2, %v546_v20 }
 0x16e   : > { %1137 = vmatprep.subr.mxu0 %v589_v63  ;;  %1177 = vmatprep.subr.mxu1 %v727_v11  ;;  %v579_v25 = vld [vmem:[#allocation9 + $0x8] sm:$0xff]  ;;  %v547_v28 = vld [vmem:[%s1903_s13 + $0x18] sm:$0xff]  ;;  %v548_v30 = vld [vmem:[%s1903_s13 + $0x20] sm:$0xff] }
 0x16f   : > { %1138 = vmatpush3.msra.mxu0 %v589_v63  ;;  %1178 = vmatpush3.msra.mxu1 %v727_v11  ;;  %v564_v29 = vld [vmem:[#allocation2 + $0x18] sm:$0xff]  ;;  %v578_v32 = vld [vmem:[#allocation9] sm:$0xff]  ;;  %v571_v33 = vadd.f32 %v563_v26, %v555_v23  ;;  %v557_v34 = vmul.f32 %v1906_v2, %v547_v28  ;;  %v720_v35 = vld [vmem:[#allocation10 + $0x30] sm:$0xff]  ;;  %v558_v38 = vmul.f32 %v1906_v2, %v548_v30 }
 0x170   : > { %1139 = vmatprep.subr.mxu0 %v588_v1  ;;  %1179 = vmatprep.subr.mxu1 %v726_v13  ;;  %v721_v31 = vld [vmem:[#allocation10 + $0x38] sm:$0xff]  ;;  %v572_v36 = vadd.f32 %v564_v29, %v556_v27  ;;  %v565_v37 = vld [vmem:[#allocation2 + $0x10] sm:$0xff]  ;;  %v549_v39 = vld [vmem:[%s1903_s13 + $0x28] sm:$0xff] }
 0x171   : > { %1140 = vmatpush3.msra.mxu0 %v588_v1  ;;  %1180 = vmatpush3.msra.mxu1 %v726_v13  ;;  %v566_v40 = vld [vmem:[#allocation2 + $0x8] sm:$0xff]  ;;  %v550_v41 = vld [vmem:[%s1903_s13 + $0x30] sm:$0xff]  ;;  %v573_v43 = vadd.f32 %v565_v37, %v557_v34  ;;  %v559_v44 = vmul.f32 %v1906_v2, %v549_v39  ;;  %v718_v45 = vld [vmem:[#allocation10 + $0x20] sm:$0xff] }
 0x172   : > { %1141 = vmatprep.subr.mxu0 %v587_v5  ;;  %1181 = vmatprep.subr.mxu1 %v725_v15  ;;  %v719_v42 = vld [vmem:[#allocation10 + $0x28] sm:$0xff]  ;;  %v574_v46 = vadd.f32 %v566_v40, %v558_v38  ;;  %v567_v47 = vld [vmem:[#allocation2 + $0x20] sm:$0xff]  ;;  %v560_v48 = vmul.f32 %v1906_v2, %v550_v41  ;;  %v551_v49 = vld [vmem:[%s1903_s13 + $0x38] sm:$0xff] }
 0x173   : > { %1142 = vmatpush3.msra.mxu0 %v587_v5  ;;  %1182 = vmatpush3.msra.mxu1 %v725_v15  ;;  %v568_v50 = vld [vmem:[#allocation2 + $0x28] sm:$0xff]  ;;  %v575_v51 = vadd.f32 %v567_v47, %v559_v44  ;;  %v561_v52 = vmul.f32 %v1906_v2, %v551_v49  ;;  %v569_v54 = vld [vmem:[#allocation2 + $0x38] sm:$0xff]  ;;  %v716_v57 = vld [vmem:[#allocation10 + $0x10] sm:$0xff] }
 0x174   : > { %1143 = vmatprep.subr.mxu0 %v586_v8  ;;  %1183 = vmatprep.subr.mxu1 %v724_v17  ;;  %v576_v53 = vadd.f32 %v568_v50, %v560_v48  ;;  %v717_v56 = vld [vmem:[#allocation10 + $0x18] sm:$0xff]  ;;  %v715_v58 = vld [vmem:[#allocation10 + $0x8] sm:$0xff]  ;;  %v714_v59 = vld [vmem:[#allocation10] sm:$0xff] }
 0x175   : > { %1144 = vmatpush3.msra.mxu0 %v586_v8  ;;  %1184 = vmatpush3.msra.mxu1 %v724_v17  ;;  %v577_v55 = vadd.f32 %v569_v54, %v561_v52  ;;  %v1004_v60 = vld [vmem:[%s2012_s4] ss:$0 sm:$0xff] }
 0x176   : > { %1145 = vmatprep.subr.mxu0 %v585_v10  ;;  %1185 = vmatprep.subr.mxu1 %v723_v21 }
 0x177   : > { %1146 = vmatpush3.msra.mxu0 %v585_v10  ;;  %1186 = vmatpush3.msra.mxu1 %v723_v21  ;;  %v1005_v21 = vld [vmem:[%s2057_s2] ss:$0 sm:$0xff] }
 0x178   : > { %1147 = vmatprep.subr.mxu0 %v584_v12  ;;  %1187 = vmatprep.subr.mxu1 %v722_v24 }
 0x179   : > { %1148 = vmatpush3.msra.mxu0 %v584_v12  ;;  %1188 = vmatpush3.msra.mxu1 %v722_v24 }
 0x17a   : > { %1149 = vmatprep.subr.mxu0 %v583_v14  ;;  %1189 = vmatprep.subr.mxu1 %v721_v31 }
 0x17b   : > { %1150 = vmatpush3.msra.mxu0 %v583_v14  ;;  %1190 = vmatpush3.msra.mxu1 %v721_v31 }
 0x17c   : > { %1151 = vmatprep.subr.mxu0 %v582_v16  ;;  %1191 = vmatprep.subr.mxu1 %v720_v35 }
 0x17d   : > { %1152 = vmatpush3.msra.mxu0 %v582_v16  ;;  %1192 = vmatpush3.msra.mxu1 %v720_v35 }
 0x17e   : > { %1153 = vmatprep.subr.mxu0 %v581_v18  ;;  %1193 = vmatprep.subr.mxu1 %v719_v42 }
 0x17f   : > { %1154 = vmatpush3.msra.mxu0 %v581_v18  ;;  %1194 = vmatpush3.msra.mxu1 %v719_v42 }
 0x180   : > { %1155 = vmatprep.subr.mxu0 %v580_v22  ;;  %1195 = vmatprep.subr.mxu1 %v718_v45 }
 0x181   : > { %1156 = vmatpush3.msra.mxu0 %v580_v22  ;;  %1196 = vmatpush3.msra.mxu1 %v718_v45 }
 0x182   : > { %1157 = vmatprep.subr.mxu0 %v579_v25  ;;  %1197 = vmatprep.subr.mxu1 %v717_v56 }
 0x183   : > { %1158 = vmatpush3.msra.mxu0 %v579_v25  ;;  %1198 = vmatpush3.msra.mxu1 %v717_v56 }
 0x184   : > { %1159 = vmatprep.subr.mxu0 %v578_v32  ;;  %1199 = vmatprep.subr.mxu1 %v716_v57 }
 0x185   : > { %1160 = vmatpush3.msra.mxu0 %v578_v32  ;;  %1200 = vmatpush3.msra.mxu1 %v716_v57 }
 0x186   : > { %1162 = vmatmul.mubr.f32.vlgmr.msra.gmra.mxu0 %v571_v33  ;;  %1201 = vmatprep.subr.mxu1 %v715_v58 }
 0x187   : > { %1164 = vmatprep.mubr.f32.mxu0 %v572_v36  ;;  %1202 = vmatpush3.msra.mxu1 %v715_v58 }
 0x188   : > { %1203 = vmatprep.subr.mxu1 %v714_v59 }
 0x189   : > { %1204 = vmatpush3.msra.mxu1 %v714_v59 }
 0x18a   : > { %1165 = vmatmul.mubr.f32.gmra.mxu0 %v573_v43 }
 0x18b   : > { %1167 = vmatprep.mubr.f32.mxu0 %v574_v46 }
 0x18e   : > { %1168 = vmatmul.mubr.f32.gmra.mxu0 %v575_v51 }
 0x18f   : > { %1170 = vmatprep.mubr.f32.mxu0 %v576_v53 }
 0x192   : > { %1171 = vmatmul.mubr.f32.gmra.mxu0 %v577_v55 }
 0x246   : > { %v1163_v61 = vpop.f32.mrf.mxu0 }
 0x247   : > { %v673_v62 = vadd.f32 %v1163_v61, %v1004_v60 }
 0x248   : > { %v667_v63 = vpop.f32.mrf.mxu0 }
 0x249   : > { %v668_v0 = vadd.f32 %v1004_v60, %v667_v63  ;;  %v707_v3 = vmax.f32 %v673_v62, 0.0 }
 0x24a   : > { %v1166_v1 = vpop.f32.mrf.mxu0 }
 0x24b   : > { %v706_v2 = vmax.f32 %v668_v0, 0.0  ;;  %v683_v4 = vadd.f32 %v1166_v1, %v1004_v60 }
 0x24c   : > { %v677_v5 = vpop.f32.mrf.mxu0 }
 0x24d   : > { %v678_v6 = vadd.f32 %v1004_v60, %v677_v5  ;;  %1205 = vmatprep.mubr.f32.mxu1 %v706_v2  ;;  %v709_v9 = vmax.f32 %v683_v4, 0.0 }
 0x24e   : > { %v1169_v7 = vpop.f32.mrf.mxu0  ;;  %1206 = vmatmul.mubr.f32.vlgmr.msra.gmra.mxu1 %v707_v3 }
 0x24f   : > { %v708_v8 = vmax.f32 %v678_v6, 0.0  ;;  %v693_v10 = vadd.f32 %v1169_v7, %v1004_v60 }
 0x250   : > { %v687_v11 = vpop.f32.mrf.mxu0 }
 0x251   : > { %v688_v12 = vadd.f32 %v1004_v60, %v687_v11  ;;  %1208 = vmatprep.mubr.f32.mxu1 %v708_v8  ;;  %v711_v15 = vmax.f32 %v693_v10, 0.0 }
 0x252   : > { %v1172_v13 = vpop.f32.mrf.mxu0  ;;  %1209 = vmatmul.mubr.f32.gmra.mxu1 %v709_v9 }
 0x253   : > { %v710_v14 = vmax.f32 %v688_v12, 0.0  ;;  %v703_v16 = vadd.f32 %v1172_v13, %v1004_v60 }
 0x254   : > { %v697_v17 = vpop.f32.mrf.mxu0 }
 0x255   : > { %v698_v18 = vadd.f32 %v1004_v60, %v697_v17  ;;  %1211 = vmatprep.mubr.f32.mxu1 %v710_v14  ;;  %v713_v20 = vmax.f32 %v703_v16, 0.0 }
 0x256   : > { %1212 = vmatmul.mubr.f32.gmra.mxu1 %v711_v15 }
 0x257   : > { %v712_v19 = vmax.f32 %v698_v18, 0.0 }
 0x259   : > { %1214 = vmatprep.mubr.f32.mxu1 %v712_v19 }
 0x25a   : > { %1215 = vmatmul.mubr.f32.gmra.mxu1 %v713_v20 }
 0x30e   : > { %v1207_v22 = vpop.f32.mrf.mxu1 }
 0x30f   : > { %v809_v23 = vadd.f32 %v1207_v22, %v1005_v21 }
 0x310   : > { %v803_v24 = vpop.f32.mrf.mxu1 }
 0x311   : > { %843 = vst [vmem:[%s1875_s29 + $0x8] sm:$0xff] %v809_v23  ;;  %v804_v25 = vadd.f32 %v1005_v21, %v803_v24 }
 0x312   : > { %v1210_v26 = vpop.f32.mrf.mxu1 }
 0x313   : > { %842 = vst [vmem:[%s1875_s29] sm:$0xff] %v804_v25  ;;  %v819_v27 = vadd.f32 %v1210_v26, %v1005_v21 }
 0x314   : > { %v813_v28 = vpop.f32.mrf.mxu1 }
 0x315   : > { %845 = vst [vmem:[%s1875_s29 + $0x18] sm:$0xff] %v819_v27  ;;  %v814_v29 = vadd.f32 %v1005_v21, %v813_v28 }
 0x316   : > { %v1213_v30 = vpop.f32.mrf.mxu1 }
 0x317   : > { %844 = vst [vmem:[%s1875_s29 + $0x10] sm:$0xff] %v814_v29  ;;  %v829_v31 = vadd.f32 %v1213_v30, %v1005_v21 }
 0x318   : > { %v823_v32 = vpop.f32.mrf.mxu1 }
 0x319   : > { %847 = vst [vmem:[%s1875_s29 + $0x28] sm:$0xff] %v829_v31  ;;  %v824_v33 = vadd.f32 %v1005_v21, %v823_v32 }
 0x31a   : > { %v1216_v34 = vpop.f32.mrf.mxu1 }
 0x31b   : > { %846 = vst [vmem:[%s1875_s29 + $0x20] sm:$0xff] %v824_v33  ;;  %v839_v35 = vadd.f32 %v1216_v34, %v1005_v21 }
 0x31c   : > { %v833_v36 = vpop.f32.mrf.mxu1 }
 0x31d   : > { %849 = vst [vmem:[%s1875_s29 + $0x38] sm:$0xff] %v839_v35  ;;  %v834_v37 = vadd.f32 %v1005_v21, %v833_v36 }
 0x31f   : > { %848 = vst [vmem:[%s1875_s29 + $0x30] sm:$0xff] %v834_v37 }
 0x320 PF: > { %s2058_s5 = sld [smem:[#allocation19_spill]]  ;;  %s1012_s6 = sshll.u32 %s1610_s0, 10 }
 0x321   : > { %s2059_s14 = sld [smem:[#allocation27_spill]]  ;;  %s864_s22 = sshll.u32 %s1875_s29, 4  ;;  %s1944_s22 = int_to_ptr.vmem [resolvable:$true] %s864_s22 }
 0x322   : > { %s1948_s16 = scalar_lea.sflag [#allocation6], %s355_s12  ;;  %s1494_s19 = scalar_lea.vmem %s1944_s22, 1024 }
 0x323   : > { %p1495_p7 = scmp.ne.s32.totalorder %s1944_s22, %s1494_s19  ;;  %s1632_s0 = smov [#allocation12]  }
 0x324   : > { %s1498_s18 = sshll.u32 %s1632_s0, 4  ;;  %s1499_s18 = int_to_ptr.vmem [resolvable:$false] %s1498_s18 }
 0x325   : > { %s1500_s17 = scalar_lea.vmem %s1499_s18, 2048  ;;  %p1501_p1 = scmp.lt.s32.totalorder %s1944_s22, %s1499_s18 }
 0x326   : > { %p2060_p5 = scmp.ne.s32.totalorder %s2058_s5, 0  ;;  %p1502_p4 = scmp.lt.s32.totalorder %s1500_s17, %s1494_s19 }
 0x327   : > { %s1941_s23 = scalar_lea.hbm %s2059_s14, %s1012_s6 }
 0x328   : > { %p1496_p11 = pnand %p1495_p7, %p2060_p5  ;;  %p1503_p2 = por %p1502_p4, %p1501_p1 }
 0x32a   : > { %p1497_p13 = pneg %p1496_p11 }
 0x32c   : > { %p1504_p12 = pnand %p1503_p2, %p1497_p13 }
 0x32e   : > { %1507 = shalt.err (!%p1504_p12)
}
 0x32f   : > { %s1508_s12 = scalar_lea.hbm %s1941_s23, 1024  ;;  %s1512_s9 = scalar_lea.hbm %s2059_s14, 4096 }
 0x330   : > { %p1509_p10 = scmp.ne.s32.totalorder %s1941_s23, %s1508_s12  ;;  %p1513_p9 = scmp.lt.s32.totalorder %s1941_s23, %s2059_s14 }
 0x331   : > { %p1514_p6 = scmp.lt.s32.totalorder %s1512_s9, %s1508_s12 }
 0x332   : > { %p1510_p3 = pnand %p1509_p10, %p2060_p5 }
 0x333   : > { %p1515_p0 = por %p1514_p6, %p1513_p9 }
 0x334   : > { %p1511_p8 = pneg %p1510_p3 }
 0x336   : > { %p1516_p7 = pnand %p1515_p0, %p1511_p8 }
 0x338   : > { %1519 = shalt.err (!%p1516_p7)
}
 0x339   : > { %s1633_s21 = smov 128   ;;  %s1634_s3 = smov 8  }
 0x33a   : > { %1263 = dma.vmem_to_hbm [thread:$0]  (%p2060_p5), %s1944_s22, 1024, %s1941_s23, %s1948_s16, %s1633_s21, %s1633_s21, %s1634_s3  }
 0x33b PF: > { %s2061_s2 = sld [smem:[#allocation18_spill]] }
 0x33c   : > { %s2062_s6 = sld [smem:[#allocation17_spill]] }
 0x33d   : > { %s2063_s7 = sld [smem:[#allocation20_spill]] }
 0x341   : > { %p1290_p11 = scmp.ge.s32.totalorder %s2061_s2, 2 }
 0x342   : > { %s879_s15 = sand.u32 1, %s2062_s6  }
 0x343   : > { %p2064_p13 = scmp.ne.s32.totalorder %s2063_s7, 0  ;;  %s880_s19 = scalar_lea.sflag [#allocation6], %s879_s15 }
 0x345   : > { %p1280_p1 = pnand %p1290_p11, %p2064_p13 }
 0x347   : > { %p1281_p4 = pneg %p1280_p1 }
 0x349   : > { %1577 = dma.done.wait (%p1281_p4), %s880_s19, 1024  }
 0x34a   : > { %1579 = vsyncadd (%p1281_p4), %s880_s19, 4294966272  ;;  %s26_s12 = sadd.s32 1, %s2061_s2   ;;  %s2065_s5 = smov %s1846_s26 }
 0x34b   : > { %p23_p2 = scmp.ge.s32.totalorder %s26_s12, 10   ;;  %s2066_s23 = sld [smem:[#allocation21_spill]] }
 0x34c   : > { %s2067_s22 = sld [smem:[#allocation22_spill]]  ;;  %s2068_s26 = smov %s1586_s27 }
 0x34d   : > { %s2069_s27 = smov %s1590_s28  ;;  %s2070_s28 = smov %s1841_s20 }
 0x34e   : > { %s2071_s29 = smov %s1598_s30  ;;  %s2072_s30 = smov %s1602_s8 }
 0x34f   : > { %s2073_s8 = smov %s2065_s5  ;;  %s2074_s9 = smov %s1614_s10 }
 0x350   : > { %s2075_s0 = smov %s1618_s11  ;;  %25 = sbr.rel (!%p23_p2) target bundleno = 18 (0x12), region = 115 }
 0x351   : > { %s2076_s10 = smov %s2066_s23 }
 0x352   : > { %s2077_s11 = smov %s2067_s22 }
 0x355   :  { %885 = vsyncpa [#allocation5], 1 }
 0x356   :  { %887 = vsyncpa [#allocation5 + $0x1], 1 }
 0x357   :  { %888 = vsyncpa [#allocation8], 1 }
 0x358   :  { %889 = vsyncpa [#allocation11], 1 }
 0x359   :  { %890 = vsyncpa [#allocation6], 1 }
 0x35a   :  { %892 = vsyncpa [#allocation6 + $0x1], 1 }

</bundles_post_ra>
